<compile_context>
chip_gen: v7x
topology: tpu7x:2x2x1
jax: 0.10.0
libtpu: 0.0.40
codegen_flags: <defaults>
</compile_context>

<pallas_src>
import functools

import jax
import jax.numpy as jnp
from jax.experimental import pallas as pl
from jax.experimental.pallas import tpu as pltpu


def _cdiv(a, b):
    return -(-a // b)


def _round_up(a, b):
    return _cdiv(a, b) * b


def _conv1d_tap_kernel(w_ref, x_ref, b_ref, o_ref):
    """One (batch, lane-tile) grid step.

    w_ref: (K, C_out_p, C_in_p)  resident per-tap weights
    x_ref: (C_in_p, TN + halo)   halo'd activation tile, lanes = positions
    b_ref: (C_out_p, 1)          f32 bias
    o_ref: (C_out_p, TN)         lane-dense output tile
    """
    k = w_ref.shape[0]
    tn = o_ref.shape[1]
    # K shifted sub-matmuls accumulating in f32 (static lane offsets).
    acc = jnp.dot(w_ref[0], x_ref[:, 0:tn], preferred_element_type=jnp.float32)
    for t in range(1, k):
        acc = acc + jnp.dot(w_ref[t], x_ref[:, t:t + tn],
                            preferred_element_type=jnp.float32)
    o_ref[...] = (acc + b_ref[...]).astype(o_ref.dtype)   # f32 epilogue, one store


def sampadding_conv1d(x, weight, bias=None, *, compute_dtype=None,
                      lane_tile=1024, vmem_budget_bytes=12 * 1024 * 1024):
    """Same-padding Conv1d matching SampaddingConv1D.forward.

    x:      (B, C_in, L)
    weight: (C_out, C_in, K)
    bias:   (C_out,) or None
    compute_dtype: optional MXU operand dtype (jnp.bfloat16 recommended on
        v6e/v7x); accumulation and bias epilogue are always f32.
    returns (B, C_out, L) in x.dtype
    """
    B, c_in, L = x.shape
    c_out, _, K = weight.shape
    pad_left = (K - 1) // 2
    pad_right = K // 2

    op_dtype = jnp.dtype(compute_dtype) if compute_dtype is not None else jnp.dtype(x.dtype)
    out_dtype = jnp.dtype(x.dtype)
    op_bytes = op_dtype.itemsize
    out_bytes = out_dtype.itemsize

    # Sublane granules: unmasked MXU feed + unmasked epilogue store.
    sub = 8 if op_bytes >= 4 else 16
    cin_p = _round_up(c_in, sub)
    cout_p = _round_up(c_out, max(sub, 8 if out_bytes >= 4 else 16))

    # --- lane tiling (always a multiple of 128; VMEM-budget aware) ----------
    ln = _round_up(L, 128)                          # lane-padded output length
    lane_tile = max(128, _round_up(int(lane_tile), 128))
    tn = min(lane_tile, ln)
    halo = _round_up(K - 1, 128) if K > 1 else 0    # halo rounded to lane granule

    def _vmem_use(t):
        act = 2 * cin_p * (t + halo) * op_bytes     # double-buffered input tile
        out = 2 * cout_p * t * out_bytes            # double-buffered output tile
        wgt = 2 * K * cout_p * cin_p * op_bytes + 2 * cout_p * 4
        return act + out + wgt

    while tn > 128 and _vmem_use(tn) > vmem_budget_bytes:
        tn -= 128
    # v7x megacore: single-batch problems should still expose >=2 grid steps.
    if B == 1 and ln >= 256:
        tn = min(tn, _round_up(_cdiv(ln, 2), 128))
    nt = _cdiv(L, tn)
    w_tile = tn + halo                              # activation tile width (x128)

    # --- activation slab: one HBM pass + a 128-lane halo per tile -----------
    x_pad = jnp.pad(x, ((0, 0), (0, cin_p - c_in), (pad_left, pad_right)))
    total = (nt - 1) * tn + w_tile                  # >= L + K - 1
    x_ext = jnp.pad(x_pad, ((0, 0), (0, 0), (0, total - (L + K - 1))))
    if nt == 1:
        slab = x_ext                                # no duplication at all
    else:
        slab = jnp.concatenate(
            [x_ext[:, :, j * tn:j * tn + w_tile] for j in range(nt)], axis=2)
    # slab: (B, cin_p, nt * w_tile)

    # --- weights / bias ------------------------------------------------------
    w_p = jnp.pad(weight, ((0, cout_p - c_out), (0, cin_p - c_in), (0, 0)))
    w_taps = jnp.transpose(w_p, (2, 0, 1))          # (K, cout_p, cin_p)
    if bias is None:
        bias = jnp.zeros((c_out,), x.dtype)
    bias2d = jnp.pad(bias.astype(jnp.float32), (0, cout_p - c_out)).reshape(cout_p, 1)

    if compute_dtype is not None:                   # cast MXU operands only
        slab = slab.astype(compute_dtype)
        w_taps = w_taps.astype(compute_dtype)

    flops = 2 * B * nt * tn * cout_p * cin_p * K
    bytes_accessed = (slab.size * op_bytes + w_taps.size * op_bytes
                      + bias2d.size * 4 + B * cout_p * nt * tn * out_bytes)
    cost = pl.CostEstimate(flops=flops, transcendentals=0,
                           bytes_accessed=bytes_accessed)

    # TODO(synk): for very large K*C_in (v7x 64 MiB VMEM) add a second
    # "arbitrary" grid axis over the channel contraction with an f32 VMEM
    # accumulator + pl.when init/finalize; single-buffer (pl.Buffered(1)) the
    # grid-invariant weight/bias blocks.
    out = pl.pallas_call(
        _conv1d_tap_kernel,
        out_shape=jax.ShapeDtypeStruct((B, cout_p, nt * tn), out_dtype),
        grid_spec=pltpu.PrefetchScalarGridSpec(
            num_scalar_prefetch=0,
            grid=(B, nt),
            in_specs=[
                pl.BlockSpec((K, cout_p, cin_p), lambda b, n: (0, 0, 0)),   # resident weights
                pl.BlockSpec((None, cin_p, w_tile), lambda b, n: (b, 0, n)),  # activation tile
                pl.BlockSpec((cout_p, 1), lambda b, n: (0, 0)),             # bias
            ],
            out_specs=pl.BlockSpec((None, cout_p, tn), lambda b, n: (b, 0, n)),
        ),
        compiler_params=pltpu.CompilerParams(
            dimension_semantics=("parallel", "parallel")),
        cost_estimate=cost,
    )(w_taps, slab, bias2d)

    return out[:, :c_out, :L]                       # drop channel/lane padding


def _reference_conv1d(x, weight, bias):
    # Pure-JAX reference: same-padding conv1d, NCL layout.
    B, c_in, L = x.shape
    c_out, _, K = weight.shape
    pad_left = (K - 1) // 2
    pad_right = K // 2
    x_pad = jnp.pad(x, ((0, 0), (0, 0), (pad_left, pad_right)))
    out = jnp.zeros((B, c_out, L), jnp.float32)
    for t in range(K):
        out = out + jnp.einsum(
            "bcl,oc->bol", x_pad[:, :, t:t + L].astype(jnp.float32),
            weight[:, :, t].astype(jnp.float32))
    return (out + bias.reshape(1, c_out, 1)).astype(x.dtype)


if __name__ == "__main__":
    # Module config: SampaddingConv1D(in_channels=4, out_channels=8, kernel_size=3)
    B, C_IN, C_OUT, L, K = 2, 4, 8, 16, 3

    key = jax.random.PRNGKey(0)
    kx, kw, kb = jax.random.split(key, 3)

    x = jax.random.normal(kx, (B, C_IN, L), dtype=jnp.float32)
    weight = jax.random.normal(kw, (C_OUT, C_IN, K), dtype=jnp.float32) * 0.1
    bias = jax.random.normal(kb, (C_OUT,), dtype=jnp.float32) * 0.1

    y_ref = _reference_conv1d(x, weight, bias)

    # f32 path (module-faithful numerics).
    conv = jax.jit(sampadding_conv1d)
    y = jax.block_until_ready(conv(x, weight, bias))
    assert y.shape == (B, C_OUT, L), y.shape
    assert jnp.allclose(y, y_ref, atol=1e-5, rtol=1e-5), "f32 mismatch vs reference"

    # bf16 MXU-operand path (recommended on v6e/v7x; f32 accumulation kept).
    conv_bf16 = jax.jit(functools.partial(sampadding_conv1d,
                                          compute_dtype=jnp.bfloat16))
    y16 = jax.block_until_ready(conv_bf16(x, weight, bias))
    assert y16.shape == (B, C_OUT, L), y16.shape
    assert jnp.allclose(y16, y_ref, atol=2e-2, rtol=2e-2), "bf16 mismatch vs reference"

    print("KERNEL_OK")
</pallas_src>

<mosaic_0001>
module attributes {stable_mosaic.version = 11 : i64} {
  func.func @_conv1d_tap_kernel(%arg0: i32, %arg1: i32, %arg2: memref<3x8x8xf32, #tpu.memory_space<vmem>>, %arg3: memref<1x8x256xf32, #tpu.memory_space<vmem>>, %arg4: memref<8x1xf32, #tpu.memory_space<vmem>>, %arg5: memref<1x8x128xf32, #tpu.memory_space<vmem>>) attributes {dimension_semantics = [#tpu.dimension_semantics<parallel>, #tpu.dimension_semantics<parallel>], iteration_bounds = array<i64: 2, 1>, scalar_prefetch = 0 : i64, scratch_operands = 0 : i64, tpu.core_type = #tpu.core_type<tc>, window_params = [{pipeline_mode = #tpu.pipeline_mode<synchronous>, transform_indices = @transform_0, window_bounds = array<i64: 3, 8, 8>}, {transform_indices = @transform_1, window_bounds = array<i64: 1, 8, 256>}, {pipeline_mode = #tpu.pipeline_mode<synchronous>, transform_indices = @transform_2, window_bounds = array<i64: 8, 1>}, {transform_indices = @transform_3, window_bounds = array<i64: 1, 8, 128>}]} {
    %c0 = arith.constant 0 : index
    %c0_0 = arith.constant 0 : index
    %c0_1 = arith.constant 0 : index
    %0 = vector.load %arg2[%c0, %c0_0, %c0_1] : memref<3x8x8xf32, #tpu.memory_space<vmem>>, vector<1x8x8xf32>
    %1 = vector.shape_cast %0 : vector<1x8x8xf32> to vector<8x8xf32>
    %c0_2 = arith.constant 0 : index
    %c0_3 = arith.constant 0 : index
    %c0_4 = arith.constant 0 : index
    %2 = vector.load %arg3[%c0_2, %c0_3, %c0_4] : memref<1x8x256xf32, #tpu.memory_space<vmem>>, vector<1x8x128xf32>
    %3 = vector.shape_cast %2 : vector<1x8x128xf32> to vector<8x128xf32>
    %cst = arith.constant dense<0.000000e+00> : vector<8x128xf32>
    %4 = tpu.matmul %1, %3, %cst {dimension_numbers = #tpu.dot_dimension_numbers<[1], [0], [0], [1], [0, 0, 1, 1], [], []>} : vector<8x8xf32>, vector<8x128xf32>, vector<8x128xf32> -> vector<8x128xf32>
    %c1 = arith.constant 1 : index
    %c0_5 = arith.constant 0 : index
    %c0_6 = arith.constant 0 : index
    %5 = vector.load %arg2[%c1, %c0_5, %c0_6] : memref<3x8x8xf32, #tpu.memory_space<vmem>>, vector<1x8x8xf32>
    %6 = vector.shape_cast %5 : vector<1x8x8xf32> to vector<8x8xf32>
    %c0_7 = arith.constant 0 : index
    %c0_8 = arith.constant 0 : index
    %c1_9 = arith.constant 1 : index
    %7 = vector.load %arg3[%c0_7, %c0_8, %c1_9] : memref<1x8x256xf32, #tpu.memory_space<vmem>>, vector<1x8x128xf32>
    %8 = vector.shape_cast %7 : vector<1x8x128xf32> to vector<8x128xf32>
    %cst_10 = arith.constant dense<0.000000e+00> : vector<8x128xf32>
    %9 = tpu.matmul %6, %8, %cst_10 {dimension_numbers = #tpu.dot_dimension_numbers<[1], [0], [0], [1], [0, 0, 1, 1], [], []>} : vector<8x8xf32>, vector<8x128xf32>, vector<8x128xf32> -> vector<8x128xf32>
    %10 = arith.addf %4, %9 : vector<8x128xf32>
    %c2 = arith.constant 2 : index
    %c0_11 = arith.constant 0 : index
    %c0_12 = arith.constant 0 : index
    %11 = vector.load %arg2[%c2, %c0_11, %c0_12] : memref<3x8x8xf32, #tpu.memory_space<vmem>>, vector<1x8x8xf32>
    %12 = vector.shape_cast %11 : vector<1x8x8xf32> to vector<8x8xf32>
    %c0_13 = arith.constant 0 : index
    %c0_14 = arith.constant 0 : index
    %c2_15 = arith.constant 2 : index
    %13 = vector.load %arg3[%c0_13, %c0_14, %c2_15] : memref<1x8x256xf32, #tpu.memory_space<vmem>>, vector<1x8x128xf32>
    %14 = vector.shape_cast %13 : vector<1x8x128xf32> to vector<8x128xf32>
    %cst_16 = arith.constant dense<0.000000e+00> : vector<8x128xf32>
    %15 = tpu.matmul %12, %14, %cst_16 {dimension_numbers = #tpu.dot_dimension_numbers<[1], [0], [0], [1], [0, 0, 1, 1], [], []>} : vector<8x8xf32>, vector<8x128xf32>, vector<8x128xf32> -> vector<8x128xf32>
    %16 = arith.addf %10, %15 : vector<8x128xf32>
    %c0_17 = arith.constant 0 : index
    %c0_18 = arith.constant 0 : index
    %17 = vector.load %arg4[%c0_17, %c0_18] : memref<8x1xf32, #tpu.memory_space<vmem>>, vector<8x1xf32>
    %18 = vector.broadcast %17 : vector<8x1xf32> to vector<8x128xf32>
    %19 = arith.addf %16, %18 : vector<8x128xf32>
    %c0_19 = arith.constant 0 : index
    %c0_20 = arith.constant 0 : index
    %c0_21 = arith.constant 0 : index
    %20 = vector.load %arg5[%c0_19, %c0_20, %c0_21] : memref<1x8x128xf32, #tpu.memory_space<vmem>>, vector<1x8x128xf32>
    %21 = vector.shape_cast %20 : vector<1x8x128xf32> to vector<8x128xf32>
    %22 = vector.shape_cast %19 : vector<8x128xf32> to vector<1x8x128xf32>
    tpu.vector_store %arg5[%c0_19, %c0_20, %c0_21], %22 {strides = array<i32>} : memref<1x8x128xf32, #tpu.memory_space<vmem>>, vector<1x8x128xf32>,
    return
  }
  func.func @transform_0(%arg0: i32, %arg1: i32) -> (i32, i32, i32) {
    %c0_i32 = arith.constant 0 : i32
    %c0_i32_0 = arith.constant 0 : i32
    %c0_i32_1 = arith.constant 0 : i32
    %c0_i32_2 = arith.constant 0 : i32
    return %c0_i32, %c0_i32_0, %c0_i32_1 : i32, i32, i32
  }
  func.func @transform_1(%arg0: i32, %arg1: i32) -> (i32, i32, i32) {
    %c0_i32 = arith.constant 0 : i32
    %c0_i32_0 = arith.constant 0 : i32
    return %arg0, %c0_i32, %arg1 : i32, i32, i32
  }
  func.func @transform_2(%arg0: i32, %arg1: i32) -> (i32, i32) {
    %c0_i32 = arith.constant 0 : i32
    %c0_i32_0 = arith.constant 0 : i32
    %c0_i32_1 = arith.constant 0 : i32
    return %c0_i32, %c0_i32_0 : i32, i32
  }
  func.func @transform_3(%arg0: i32, %arg1: i32) -> (i32, i32, i32) {
    %c0_i32 = arith.constant 0 : i32
    %c0_i32_0 = arith.constant 0 : i32
    return %arg0, %c0_i32, %arg1 : i32, i32, i32
  }
}

</mosaic_0001>

<bundles_post_ra>
// kernel: sampadding_conv1d.1
= control target key start
LH: loop header
LB: loop body
LE: loop exit
PB: predicated region body
PF: predicated region fallthrough
CT: control target
= control target key end

     0   :  { %8 = vsyncpa [#allocation3], 0  ;;  %s877_s0 = inlined_call_operand.vmem [shape: f32[3,8,8], index: 0, kind: input, shape index: {}]   ;;  %s878_s1 = inlined_call_operand.vmem [shape: f32[2,8,256], index: 1, kind: input, shape index: {}]   ;;  %s879_s2 = inlined_call_operand.vmem [shape: f32[8,1], index: 2, kind: input, shape index: {}]   ;;  %s880_s3 = inlined_call_operand.hbm [shape: f32[2,8,128], index: 3, kind: output, shape index: {}]  }
   0x1   :  { %10 = vsyncpa [#allocation3 + $0x1], 0  ;;  %s747_s12 = smov 0   ;;  %s749_s13 = smov 0  }
   0x2   :  { %s751_s14 = smov 0   ;;  %s753_s15 = smov 0  }
   0x3   :  { %s755_s16 = smov 0   ;;  %s757_s17 = smov 0  }
   0x4 LB: > { %s541_s18 = sadd.s32 4294967295, %s719_s17   ;;  %s542_s19 = sadd.s32 4294967294, %s719_s17   ;;  %s719_s17 = sphi %s757_s17, %s16_s17   ;;  %s715_s16 = sphi %s755_s16, %s887_s16   ;;  %s711_s15 = sphi %s753_s15, %s886_s15   ;;  %s707_s14 = sphi %s751_s14, %s885_s14   ;;  %s703_s13 = sphi %s749_s13, %s884_s13   ;;  %s699_s12 = sphi %s747_s12, %s883_s12  }
   0x5   : > { %s28_s20 = sadd.s32 1, %s715_s16  ;;  %s107_s21 = sadd.s32 1, %s707_s14 }
   0x6   : > { %p30_p0 = scmp.ge.s32.totalorder %s28_s20, 2  ;;  %p117_p1 = scmp.ne.s32.totalorder %s707_s14, %s703_s13 }
   0x7   : > { %p118_p2 = scmp.eq.s32.totalorder %s541_s18, 1  ;;  %p123_p3 = scmp.ne.s32.totalorder %s703_s13, %s699_s12 }
   0x8   : > { %s889_s20 = smov (%p30_p0, %s28_s20), 0  ;;  %p124_p5 = scmp.eq.s32.totalorder %s542_s19, 1 }
   0x9   : > { %p787_p4 = por %p118_p2, %p117_p1  ;;  %s102_s23 = ssub.s32 %s715_s16, %s889_s20 }
   0xa   : > { %p545_p6 = scmp.ge.s32.totalorder %s719_s17, 1  ;;  %p105_p7 = scmp.eq.s32.totalorder %s102_s23, 0 }
   0xb   : > { %p794_p8 = por %p124_p5, %p123_p3  ;;  %p161_p9 = scmp.lt.s32.totalorder %s719_s17, 3 }
   0xc   : > { %s800_s25 = scalar_select %p105_p7, %s707_s14, %s107_s21  }
   0xd   : > { %p162_p10 = pnand %p545_p6, %p161_p9 }
   0xe   : > { %p190_p11 = scmp.lt.s32.totalorder (!%p162_p10), %s711_s15, 1  ;;  %v721_v0 = vmov (!%p162_p10), 0.0   ;;  %vm722_vm0 = vmmov (!%p162_p10), 0   ;;  %v723_v1 = vmov (!%p162_p10), 0   ;;  %vm214_vm1 = vcmask (!%p162_p10), 64512   ;;  %v199_v3 = vld [vmem:[%s877_s0] sm:$0xff] (!%p162_p10) }
   0xf   : > { %165 = sbr.rel (%p162_p10) target bundleno = 382 (0x17e), region = 32  ;;  %565 = vmatprep.subr.mxu0 (!%p162_p10), %v721_v0  ;;  %567 = vmatprep.mubr.msk.f32.mxu0 (!%p162_p10), %vm722_vm0, %v721_v0  ;;  %s724_s6 = smov (!%p162_p10), 126   ;;  %v444_v5 = vld [vmem:[%s879_s2] sm:$0xff] (!%p162_p10)  ;;  %vm211_vm2 = vcmask (!%p162_p10), 1039360   ;;  %vm367_vm3 = vcmask (!%p162_p10), 1031168   ;;  %v549_v10 = vld [vmem:[%s877_s0 + $0x8] sm:$0xff] (!%p162_p10) }
  0x10   : > { %570 = vmatprep.subr.mxu1 (!%p162_p10), %v721_v0  ;;  %572 = vmatprep.mubr.msk.f32.mxu1 (!%p162_p10), %vm722_vm0, %v721_v0  ;;  %s725_s7 = smov (!%p162_p10), 127   ;;  %v552_v13 = vld [vmem:[%s877_s0 + $0x10] sm:$0xff] (!%p162_p10)  ;;  %s186_s21 = sand.u32 (!%p162_p10), 1, %s703_s13  }
  0x11   : > { %640 = vset.pattern.permute.xlu0 (!%p162_p10), %v723_v1  ;;  %s546_s23 = sshll.u32 (!%p162_p10), %s186_s21, 3  ;;  %s453_s5 = scalar_lea.sflag (!%p162_p10), [#allocation3], %s186_s21 }
  0x16   : > { %s191_s26 = scalar_select %p190_p11, %s711_s15, 1 }
  0x18   : > { %s558_s27 = sshll.u32 %s191_s26, 4  ;;  %s555_s26 = sshll.u32 %s711_s15, 7 }
  0x19   : > { %s197_s30 = scalar_lea.vmem %s878_s1, %s558_s27  ;;  %s188_s27 = scalar_lea.vmem [#allocation2], %s546_s23 }
  0x1a   : > { %v203_v2 = vld [vmem:[%s197_s30] sm:$0xff]  ;;  %v204_v4 = vld [vmem:[%s197_s30 + $0x8] sm:$0xff]  ;;  %s467_s28 = sshll.u32 %s188_s27, 4  ;;  %s830_s4 = scalar_lea.hbm %s880_s3, %s555_s26  ;;  %s832_s28 = int_to_ptr.vmem [resolvable:$true] %s467_s28 }
  0x1b   : > { %363 = vrot.lane.b32.xlu1 %v203_v2, %s724_s6  ;;  %207 = vrot.lane.b32.xlu0 %v203_v2, %s725_s7  ;;  %s726_s15 = smov [#allocation2]  }
  0x1c   : > { %571 = vmatpush3.msra.mxu1 %v203_v2 }
  0x1d   : > { %573 = vmatmul.mubr.msk.f32.vlgmr.msra.gmra.mrb[0].mxu1 %vm214_vm1, %v199_v3 }
  0x1f   : > { %365 = vrot.lane.b32.xlu1 %v204_v4, %s724_s6  ;;  %209 = vrot.lane.b32.xlu0 %v204_v4, %s725_s7  ;;  %s641_s6 = scalar_lea.vmem %s832_s28, 128  ;;  %s645_s7 = sshll.u32 %s726_s15, 4  ;;  %s646_s7 = int_to_ptr.vmem [resolvable:$false] %s645_s7 }
  0x20   : > { %p642_p12 = scmp.ne.s32.totalorder %s832_s28, %s641_s6  ;;  %s647_s8 = scalar_lea.vmem %s646_s7, 256 }
  0x21   : > { %p648_p1 = scmp.lt.s32.totalorder %s832_s28, %s646_s7  ;;  %p649_p2 = scmp.lt.s32.totalorder %s647_s8, %s641_s6 }
  0x22   : > { %p643_p13 = pnand %p642_p12, %p787_p4 }
  0x23   : > { %447 = vperm.xlu0 %640, %v444_v5   ;;  %p650_p3 = por %p649_p2, %p648_p1 }
  0x24   : > { %p644_p0 = pneg %p643_p13 }
  0x26   : > { %p651_p5 = pnand %p650_p3, %p644_p0 }
  0x8d   : > { %v364_v6 = vpop.permute.xlu1 %363  ;;  %v208_v7 = vpop.permute.xlu0 %207 }
  0x91   : > { %v366_v8 = vpop.permute.xlu1 %365  ;;  %v210_v9 = vpop.permute.xlu0 %209 }
  0x92   : > { %v212_v11 = vsel %vm211_vm2, %v208_v7, %v210_v9  ;;  %v368_v12 = vsel %vm367_vm3, %v364_v6, %v366_v8 }
  0x93   : > { %566 = vmatpush3.msra.mxu0 %v212_v11 }
  0x94   : > { %568 = vmatmul.mubr.msk.f32.vlgmr.msra.gmra.mrb[0].mxu0 %vm214_vm1, %v549_v10  ;;  %575 = vmatprep.subr.mxu0 %v721_v0 }
  0x95   : > { %576 = vmatpush3.msra.mxu0 %v368_v12  ;;  %577 = vmatprep.mubr.msk.f32.mxu0 %vm722_vm0, %v721_v0 }
  0x98   : > { %578 = vmatmul.mubr.msk.f32.vlgmr.msra.gmra.mrb[2].mxu0 %vm214_vm1, %v552_v13 }
  0xa2   : > { %v448_v20 = vpop.permute.xlu0 %447 }
  0xf0   : > { %v357_v14 = vpop.f32.mrb[0].mxu1 }
  0xf1   : > { %v574_v15 = vpop.f32.mrb[1].mxu1 }
 0x167   : > { %v284_v16 = vpop.f32.mrb[0].mxu0 }
 0x168   : > { %v569_v17 = vpop.f32.mrb[1].mxu0  ;;  %v358_v18 = vadd.f32 %v357_v14, %v284_v16 }
 0x16b   : > { %v439_v19 = vpop.f32.mrb[2].mxu0 }
 0x16c   : > { %v443_v21 = vadd.f32 %v439_v19, %v358_v18  ;;  %v579_v22 = vpop.f32.mrb[3].mxu0 }
 0x16e   : > { %v450_v23 = vadd.f32 %v448_v20, %v443_v21 }
 0x170   : > { %451 = vst [vmem:[%s188_s27] sm:$0xff] %v450_v23 }
 0x171   : > { %654 = shalt.err (!%p651_p5)
}
 0x172   : > { %s655_s9 = scalar_lea.hbm %s830_s4, 128  ;;  %s659_s18 = scalar_lea.hbm %s880_s3, 256 }
 0x173   : > { %p656_p6 = scmp.ne.s32.totalorder %s830_s4, %s655_s9  ;;  %p660_p10 = scmp.lt.u32.totalorder %s830_s4, %s880_s3 }
 0x174   : > { %p661_p11 = scmp.lt.u32.totalorder %s659_s18, %s655_s9  ;;  %p663_p13 = scmp.lt.u32.totalorder %s655_s9, %s830_s4 }
 0x175   : > { %p657_p7 = pnand %p656_p6, %p787_p4 }
 0x176   : > { %p662_p12 = por %p661_p11, %p660_p10 }
 0x177   : > { %p658_p9 = pneg %p657_p7 }
 0x178   : > { %p664_p0 = por %p663_p13, %p662_p12 }
 0x17a   : > { %p665_p1 = pnand %p664_p0, %p658_p9 }
 0x17c   : > { %668 = shalt.err (!%p665_p1)
}
 0x17d   : > { %580 = dma.vmem_to_hbm [thread:$0]  (%p787_p4), %s832_s28, 128, %s830_s4, %s453_s5  }
 0x17e PF: > { %p586_p2 = scmp.ge.s32.totalorder %s719_s17, 2  ;;  %s479_s23 = sand.u32 1, %s699_s12  }
 0x17f   : > { %s480_s26 = scalar_lea.sflag [#allocation3], %s479_s23 }
 0x180   : > { %p583_p3 = pnand %p586_p2, %p794_p8 }
 0x182   : > { %694 = dma.done.wait (!%p583_p3), %s480_s26, 128  }
 0x183   : > { %696 = vsyncadd (!%p583_p3), %s480_s26, 4294967168  ;;  %s16_s17 = sadd.s32 1, %s719_s17   ;;  %s883_s12 = smov %s703_s13 }
 0x184   : > { %p13_p5 = scmp.ge.s32.totalorder %s16_s17, 4   ;;  %s884_s13 = smov %s707_s14 }
 0x185   : > { %s885_s14 = smov %s800_s25  ;;  %s886_s15 = smov %s715_s16 }
 0x186   : > { %s887_s16 = smov %s889_s20  ;;  %15 = sbr.rel (!%p13_p5) target bundleno = 4 (0x4), region = 69 }
 0x18d   :  { %485 = vsyncpa [#allocation3], 1 }
 0x18e   :  { %487 = vsyncpa [#allocation3 + $0x1], 1 }

</bundles_post_ra>
